<compile_context>
chip_gen: v7x
topology: tpu7x:2x2x1
jax: 0.10.0
libtpu: 0.0.40
codegen_flags: <defaults>
</compile_context>

<pallas_src>
import functools

import jax
import jax.numpy as jnp
from jax.experimental import pallas as pl
from jax.experimental.pallas import tpu as pltpu

_LANE = 128
_SUBLANE = 8


def _ce_partial_kernel(logits_ref, target_ref, out_ref, *, n_rows, compute_dtype):
    # logits_ref: [TR, C]   one head x one row tile (head dim squeezed by BlockSpec)
    # target_ref: [TR, 1]   int32 class indices (same block reused by every head)
    # out_ref:    [8, 128]  f32; partial CE sum at [0, 0], zeros elsewhere
    logits = logits_ref[...]
    if logits.dtype != compute_dtype:
        logits = logits.astype(compute_dtype)            # no-op when dtypes match
    tgt = target_ref[...]                                 # [TR, 1] int32
    tr, c = logits.shape

    # Row validity: (a) rows past N in a padded final tile, (b) ignored / negative
    # targets (torch.nn.CrossEntropyLoss default ignore_index=-100).
    row = pl.program_id(1) * tr + jax.lax.broadcasted_iota(jnp.int32, (tr, 1), 0)
    valid = jnp.logical_and(row < n_rows, tgt >= 0)       # [TR, 1]

    # Numerically stable row-wise logsumexp.  The big [TR, C] slab stays in the
    # compute dtype (bf16 on v6e/v7x for bf16 inputs); lane sums accumulate in f32.
    m = jnp.max(logits, axis=-1, keepdims=True)                                # [TR, 1]
    se = jnp.sum(jnp.exp(logits - m), axis=-1, keepdims=True,
                 dtype=jnp.float32)                                            # [TR, 1] f32
    lse = m.astype(jnp.float32) + jnp.log(se)                                  # [TR, 1] f32

    # logits[row, target[row]] via lane-index compare (no dynamic gather on TPU);
    # the row-validity mask is folded into the same select -> one pass over [TR, C].
    cls = jax.lax.broadcasted_iota(jnp.int32, (tr, c), 1)                      # [TR, C]
    sel = jnp.logical_and(cls == tgt, valid)                                   # [TR, C]
    picked = jnp.sum(jnp.where(sel, logits, jnp.zeros_like(logits)),
                     axis=-1, keepdims=True, dtype=jnp.float32)                # [TR, 1] f32
    # NOTE: out-of-range targets (tgt >= C) silently contribute lse (picked = 0)
    # instead of raising like PyTorch.

    ce = jnp.where(valid, lse - picked, 0.0)                                   # [TR, 1] f32
    tile_sum = jnp.sum(ce)

    # Lane-aligned (8, 128) output block: scalar at [0, 0], zeros elsewhere.
    is00 = jnp.logical_and(
        jax.lax.broadcasted_iota(jnp.int32, (_SUBLANE, _LANE), 0) == 0,
        jax.lax.broadcasted_iota(jnp.int32, (_SUBLANE, _LANE), 1) == 0)
    out_ref[...] = jnp.where(is00, tile_sum, 0.0).astype(out_ref.dtype)


def my_loss(pred, target, *, compute_dtype=None, block_rows=None):
    """Sum over heads of CrossEntropyLoss(pred[p], target) (PyTorch semantics).

    pred:   [P, N, C] float logits (f32 or bf16).
    target: [N] int class indices; negative entries (PyTorch's ignore_index=-100
            convention) are ignored.  If every target is ignored the result is
            NaN (0/0), matching PyTorch.
    compute_dtype: dtype of the big [TR, C] elementwise path.  Defaults to bf16
            for bf16 inputs (v6e/v7x: halves VPU width + vreg pressure, keeps the
            kernel memory-bound) and to f32 otherwise (v5e has no bf16 VPU/EUP).
    block_rows: optional row-tile override (testing / tuning).
    """
    P, N, C = pred.shape
    if compute_dtype is None:
        compute_dtype = (jnp.bfloat16
                         if jnp.dtype(pred.dtype) == jnp.dtype(jnp.bfloat16)
                         else jnp.float32)
    compute_dtype = jnp.dtype(compute_dtype)

    tgt2d = target.astype(jnp.int32).reshape(N, 1)   # one copy, reused by every head

    # ---- Row-tile sizing --------------------------------------------------
    # Target ~2 MiB of lane-padded VMEM per logits block (minor dim C pads to 128
    # lanes in VMEM); cap rows at 2048 so the lane-padded [TR,1] target buffer and
    # the block-sized in-kernel temporaries stay well inside the 32 MiB scoped
    # limit set below, while blocks are large enough to amortise the ~0.35 us
    # per-grid-step overhead.
    itemsize = jnp.dtype(pred.dtype).itemsize
    c_pad = -(-C // _LANE) * _LANE
    block_budget = 2 * 1024 * 1024
    tr = block_budget // (c_pad * itemsize)
    tr = int(min(max(tr, _SUBLANE), 2048))
    if block_rows is not None:
        tr = int(block_rows)
    tr = max(_SUBLANE, (tr // _SUBLANE) * _SUBLANE)
    if tr >= N:
        tr = N                      # block dim == full array dim is always legal
    n_tiles = pl.cdiv(N, tr)

    kernel = functools.partial(_ce_partial_kernel, n_rows=N,
                               compute_dtype=compute_dtype)

    partials = pl.pallas_call(
        kernel,
        grid=(P, n_tiles),
        in_specs=[
            # [P, N, C] logits: one head x one row tile, full class dim per block.
            pl.BlockSpec((None, tr, C), lambda p, r: (p, r, 0)),
            # [N, 1] targets: same row-tile block reused by every head.
            pl.BlockSpec((tr, 1), lambda p, r: (r, 0)),
        ],
        # One lane-aligned (8,128) f32 block per grid point; value lives at [...,0,0].
        out_specs=pl.BlockSpec((None, None, _SUBLANE, _LANE),
                               lambda p, r: (p, r, 0, 0)),
        out_shape=jax.ShapeDtypeStruct((P, n_tiles, _SUBLANE, _LANE), jnp.float32),
        compiler_params=pltpu.CompilerParams(
            # Independent work per grid point -> megacore shards P x n_tiles on v7x.
            dimension_semantics=("parallel", "parallel"),
            # Explicit scoped-VMEM budget: 2x logits buffers + lane-padded target
            # buffers + block-sized temporaries fit with ~2x headroom on all gens.
            vmem_limit_bytes=32 * 1024 * 1024,
        ),
    )(pred, tgt2d)

    # Per-head mean over non-ignored targets, summed over heads
    # == total CE sum / (# non-ignored targets).
    denom = jnp.sum((target >= 0).astype(jnp.float32))
    return jnp.sum(partials[:, :, 0, 0]) / denom


def _reference(pred, target):
    # Pure-JAX reference of the PyTorch module semantics (all targets valid).
    P, N, C = pred.shape
    x = pred.astype(jnp.float32)
    logp = jax.nn.log_softmax(x, axis=-1)
    idx = jnp.broadcast_to(target.astype(jnp.int32)[None, :, None], (P, N, 1))
    nll = -jnp.take_along_axis(logp, idx, axis=-1)          # [P, N, 1]
    return jnp.sum(jnp.mean(nll, axis=(1, 2)))


if __name__ == "__main__":
    key = jax.random.PRNGKey(0)
    k1, k2, k3, k4, k5, k6 = jax.random.split(key, 6)

    # Case 1: f32, batch not a multiple of the row tile -> multi-tile grid and
    # padded last-tile masking.
    P1, N1, C1 = 3, 20, 32
    pred1 = jax.random.normal(k1, (P1, N1, C1), dtype=jnp.float32)
    tgt1 = jax.random.randint(k2, (N1,), 0, C1, dtype=jnp.int32)
    loss1 = my_loss(pred1, tgt1, block_rows=8)
    jax.block_until_ready(loss1)
    ref1 = _reference(pred1, tgt1)
    assert jnp.allclose(loss1, ref1, rtol=1e-5, atol=1e-5), (loss1, ref1)

    # Case 2: f32, default (single-tile) path, C not a multiple of 8/128.
    P2, N2, C2 = 2, 16, 40
    pred2 = jax.random.normal(k3, (P2, N2, C2), dtype=jnp.float32)
    tgt2 = jax.random.randint(k4, (N2,), 0, C2, dtype=jnp.int32)
    loss2 = my_loss(pred2, tgt2)
    jax.block_until_ready(loss2)
    ref2 = _reference(pred2, tgt2)
    assert jnp.allclose(loss2, ref2, rtol=1e-5, atol=1e-5), (loss2, ref2)

    # Case 3: bf16 inputs -> bf16 elementwise path (v6e/v7x lever), f32 accumulation.
    P3, N3, C3 = 2, 16, 64
    pred3 = jax.random.normal(k5, (P3, N3, C3), dtype=jnp.float32).astype(jnp.bfloat16)
    tgt3 = jax.random.randint(k6, (N3,), 0, C3, dtype=jnp.int32)
    loss3 = my_loss(pred3, tgt3)
    jax.block_until_ready(loss3)
    ref3 = _reference(pred3, tgt3)
    assert jnp.allclose(loss3, ref3, rtol=3e-2, atol=3e-2), (loss3, ref3)

    print("KERNEL_OK")
</pallas_src>

<mosaic_0001>
module attributes {stable_mosaic.version = 11 : i64} {
  func.func @_ce_partial_kernel(%arg0: i32, %arg1: i32, %arg2: memref<1x8x32xf32, #tpu.memory_space<vmem>>, %arg3: memref<8x1xi32, #tpu.memory_space<vmem>>, %arg4: memref<1x1x8x128xf32, #tpu.memory_space<vmem>>) attributes {dimension_semantics = [#tpu.dimension_semantics<parallel>, #tpu.dimension_semantics<parallel>], iteration_bounds = array<i64: 3, 3>, scalar_prefetch = 0 : i64, scratch_operands = 0 : i64, tpu.core_type = #tpu.core_type<tc>, window_params = [{transform_indices = @transform_0, window_bounds = array<i64: 1, 8, 32>}, {transform_indices = @transform_1, window_bounds = array<i64: 8, 1>}, {transform_indices = @transform_2, window_bounds = array<i64: 1, 1, 8, 128>}]} {
    %c0 = arith.constant 0 : index
    %c0_0 = arith.constant 0 : index
    %c0_1 = arith.constant 0 : index
    %0 = vector.load %arg2[%c0, %c0_0, %c0_1] : memref<1x8x32xf32, #tpu.memory_space<vmem>>, vector<1x8x32xf32>
    %1 = vector.shape_cast %0 : vector<1x8x32xf32> to vector<8x32xf32>
    %c0_2 = arith.constant 0 : index
    %c0_3 = arith.constant 0 : index
    %2 = vector.load %arg3[%c0_2, %c0_3] : memref<8x1xi32, #tpu.memory_space<vmem>>, vector<8x1xi32>
    %c8_i32 = arith.constant 8 : i32
    %3 = arith.muli %arg1, %c8_i32 : i32
    %4 = tpu.iota {dimensions = array<i32: 0>} : vector<8x1xi32>
    %5 = vector.broadcast %3 : i32 to vector<8x1xi32>
    %6 = arith.addi %5, %4 : vector<8x1xi32>
    %c20_i32 = arith.constant 20 : i32
    %7 = vector.broadcast %c20_i32 : i32 to vector<8x1xi32>
    %8 = arith.cmpi slt, %6, %7 : vector<8x1xi32>
    %c0_i32 = arith.constant 0 : i32
    %9 = vector.broadcast %c0_i32 : i32 to vector<8x1xi32>
    %10 = arith.cmpi sge, %2, %9 : vector<8x1xi32>
    %11 = arith.andi %8, %10 : vector<8x1xi1>
    %cst = arith.constant dense<0xFF800000> : vector<8xf32>
    %12 = vector.multi_reduction <maximumf>, %1, %cst [1] : vector<8x32xf32> to vector<8xf32>
    %13 = vector.shape_cast %12 : vector<8xf32> to vector<8x1xf32>
    %14 = vector.broadcast %13 : vector<8x1xf32> to vector<8x32xf32>
    %15 = arith.subf %1, %14 : vector<8x32xf32>
    %16 = math.exp %15 : vector<8x32xf32>
    %cst_4 = arith.constant dense<0.000000e+00> : vector<8xf32>
    %17 = vector.multi_reduction <add>, %16, %cst_4 [1] : vector<8x32xf32> to vector<8xf32>
    %18 = vector.shape_cast %17 : vector<8xf32> to vector<8x1xf32>
    %19 = math.log %18 : vector<8x1xf32>
    %20 = arith.addf %13, %19 : vector<8x1xf32>
    %21 = tpu.iota {dimensions = array<i32: 1>} : vector<8x32xi32>
    %22 = vector.broadcast %2 : vector<8x1xi32> to vector<8x32xi32>
    %23 = arith.cmpi eq, %21, %22 : vector<8x32xi32>
    %24 = vector.broadcast %11 : vector<8x1xi1> to vector<8x32xi1>
    %25 = arith.andi %23, %24 : vector<8x32xi1>
    %cst_5 = arith.constant 0.000000e+00 : f32
    %26 = vector.broadcast %cst_5 : f32 to vector<8x32xf32>
    %27 = arith.select %25, %1, %26 : vector<8x32xi1>, vector<8x32xf32>
    %cst_6 = arith.constant dense<0.000000e+00> : vector<8xf32>
    %28 = vector.multi_reduction <add>, %27, %cst_6 [1] : vector<8x32xf32> to vector<8xf32>
    %29 = vector.shape_cast %28 : vector<8xf32> to vector<8x1xf32>
    %30 = arith.subf %20, %29 : vector<8x1xf32>
    %cst_7 = arith.constant 0.000000e+00 : f32
    %31 = vector.broadcast %cst_7 : f32 to vector<8x1xf32>
    %32 = arith.select %11, %30, %31 : vector<8x1xi1>, vector<8x1xf32>
    %33 = vector.shape_cast %32 : vector<8x1xf32> to vector<1x8x1xf32>
    %cst_8 = arith.constant dense<0.000000e+00> : vector<1xf32>
    %34 = vector.multi_reduction <add>, %33, %cst_8 [1, 2] : vector<1x8x1xf32> to vector<1xf32>
    %35 = vector.shape_cast %34 : vector<1xf32> to vector<1x1x1xf32>
    %36 = vector.extract %35[0, 0, 0] : f32 from vector<1x1x1xf32>
    %37 = tpu.iota {dimensions = array<i32: 0>} : vector<8x128xi32>
    %c0_i32_9 = arith.constant 0 : i32
    %38 = vector.broadcast %c0_i32_9 : i32 to vector<8x128xi32>
    %39 = arith.cmpi eq, %37, %38 : vector<8x128xi32>
    %40 = tpu.iota {dimensions = array<i32: 1>} : vector<8x128xi32>
    %c0_i32_10 = arith.constant 0 : i32
    %41 = vector.broadcast %c0_i32_10 : i32 to vector<8x128xi32>
    %42 = arith.cmpi eq, %40, %41 : vector<8x128xi32>
    %43 = arith.andi %39, %42 : vector<8x128xi1>
    %cst_11 = arith.constant 0.000000e+00 : f32
    %44 = vector.broadcast %36 : f32 to vector<8x128xf32>
    %45 = vector.broadcast %cst_11 : f32 to vector<8x128xf32>
    %46 = arith.select %43, %44, %45 : vector<8x128xi1>, vector<8x128xf32>
    %c0_12 = arith.constant 0 : index
    %c0_13 = arith.constant 0 : index
    %c0_14 = arith.constant 0 : index
    %c0_15 = arith.constant 0 : index
    %47 = vector.load %arg4[%c0_12, %c0_13, %c0_14, %c0_15] : memref<1x1x8x128xf32, #tpu.memory_space<vmem>>, vector<1x1x8x128xf32>
    %48 = vector.shape_cast %47 : vector<1x1x8x128xf32> to vector<8x128xf32>
    %49 = vector.shape_cast %46 : vector<8x128xf32> to vector<1x1x8x128xf32>
    tpu.vector_store %arg4[%c0_12, %c0_13, %c0_14, %c0_15], %49 {strides = array<i32>} : memref<1x1x8x128xf32, #tpu.memory_space<vmem>>, vector<1x1x8x128xf32>,
    return
  }
  func.func @transform_0(%arg0: i32, %arg1: i32) -> (i32, i32, i32) {
    %c0_i32 = arith.constant 0 : i32
    %c0_i32_0 = arith.constant 0 : i32
    return %arg0, %arg1, %c0_i32 : i32, i32, i32
  }
  func.func @transform_1(%arg0: i32, %arg1: i32) -> (i32, i32) {
    %c0_i32 = arith.constant 0 : i32
    %c0_i32_0 = arith.constant 0 : i32
    return %arg1, %c0_i32 : i32, i32
  }
  func.func @transform_2(%arg0: i32, %arg1: i32) -> (i32, i32, i32, i32) {
    %c0_i32 = arith.constant 0 : i32
    %c0_i32_0 = arith.constant 0 : i32
    %c0_i32_1 = arith.constant 0 : i32
    return %arg0, %arg1, %c0_i32, %c0_i32_0 : i32, i32, i32, i32
  }
}

</mosaic_0001>

<bundles_post_ra>
// kernel: tpu_custom_call.1
= control target key start
LH: loop header
LB: loop body
LE: loop exit
PB: predicated region body
PF: predicated region fallthrough
CT: control target
= control target key end

     0   :  { %7 = vsyncpa [#allocation3], 0  ;;  %s830_s0 = inlined_call_operand.hbm [shape: f32[3,20,32], index: 0, kind: input, shape index: {}]   ;;  %s831_s1 = inlined_call_operand.vmem [shape: s32[20,1], index: 1, kind: input, shape index: {}]   ;;  %s832_s2 = inlined_call_operand.hbm [shape: f32[3,3,8,128], index: 2, kind: output, shape index: {}]  }
   0x1   :  { %9 = vsyncpa [#allocation3 + $0x1], 0 }
   0x2   :  { %10 = vsyncpa [#allocation4], 0 }
   0x3   :  { %12 = vsyncpa [#allocation4 + $0x1], 0  ;;  %s617_s9 = smov 0   ;;  %s619_s10 = smov 0  }
   0x4   :  { %s621_s11 = smov 0   ;;  %s623_s12 = smov 0  }
   0x5   :  { %s625_s13 = smov 0   ;;  %s627_s14 = smov 0  }
   0x6   :  { %s629_s15 = smov 0   ;;  %s631_s16 = smov 0  }
   0x7 LB: > { %s365_s17 = sadd.s32 4294967295, %s597_s16   ;;  %s366_s18 = sadd.s32 4294967294, %s597_s16   ;;  %s597_s16 = sphi %s631_s16, %s18_s16   ;;  %s593_s15 = sphi %s629_s15, %s850_s15   ;;  %s589_s14 = sphi %s627_s14, %s849_s14   ;;  %s585_s13 = sphi %s625_s13, %s848_s13   ;;  %s581_s12 = sphi %s623_s12, %s847_s12   ;;  %s577_s11 = sphi %s621_s11, %s846_s11   ;;  %s573_s10 = sphi %s619_s10, %s845_s10   ;;  %s569_s9 = sphi %s617_s9, %s844_s9  }
   0x8   : > { %s27_s19 = sadd.s32 1, %s589_s14  ;;  %s30_s20 = sadd.s32 1, %s593_s15 }
   0x9   : > { %p28_p0 = scmp.ge.s32.totalorder %s27_s19, 3  ;;  %s39_s21 = sadd.s32 1, %s577_s11 }
   0xa   : > { %p46_p1 = scmp.ne.s32.totalorder %s577_s11, %s573_s10  ;;  %p47_p2 = scmp.eq.s32.totalorder %s597_s16, 0 }
   0xb   : > { %s852_s19 = smov (%p28_p0, %s27_s19), 0  ;;  %s854_s20 = smov (!%p28_p0, %s30_s20), %s593_s15 }
   0xc   : > { %s35_s22 = ssub.s32 %s589_s14, %s852_s19  ;;  %p670_p3 = por %p47_p2, %p46_p1 }
   0xd   : > { %p32_p4 = scmp.ge.s32.totalorder %s854_s20, 3  ;;  %p52_p5 = scmp.ne.s32.totalorder %s573_s10, %s569_s9 }
   0xe   : > { %p53_p6 = scmp.eq.s32.totalorder %s365_s17, 0  ;;  %p104_p7 = scmp.eq.s32.totalorder %s365_s17, 8 }
   0xf   : > { %s856_s20 = smov (%p32_p4, %s854_s20), 0  ;;  %p110_p10 = scmp.eq.s32.totalorder %s366_s18, 8 }
  0x10   : > { %p678_p8 = por %p53_p6, %p52_p5  ;;  %p682_p9 = por %p104_p7, %p46_p1 }
  0x11   : > { %s34_s26 = ssub.s32 %s593_s15, %s856_s20  ;;  %p688_p12 = por %p110_p10, %p52_p5 }
  0x12   : > { %s836_s25 = scalar_select %p682_p9, 1, 0 }
  0x13   : > { %s36_s27 = sor.u32 %s35_s22, %s34_s26  ;;  %p396_p13 = scmp.lt.s32.totalorder %s597_s16, 9 }
  0x14   : > { %p37_p11 = scmp.eq.s32.totalorder %s36_s27, 0  ;;  %s130_s29 = sand.u32 1, %s577_s11  }
  0x15   : > { %s837_s28 = scalar_select %p688_p12, 1, 0 }
  0x16   : > { %s695_s30 = scalar_select %p37_p11, %s577_s11, %s39_s21  }
  0x17   : > { %s369_s3 = sshll.u32 %s130_s29, 3  ;;  %s380_s4 = smul.u32 3, %s593_s15 }
  0x18   : > { %s134_s5 = scalar_lea.vmem [#allocation2], %s369_s3  ;;  %p700_p0 = pnand %p396_p13, %p670_p3 }
  0x19   : > { %s143_s6 = sshll.u32 %s134_s5, 4  ;;  %s139_s8 = sadd.s32 %s589_s14, %s380_s4  ;;  %s705_s6 = int_to_ptr.vmem [resolvable:$true] %s143_s6 }
  0x1a   : > { %s370_s17 = sshll.u32 %s139_s8, 7  ;;  %s131_s23 = scalar_lea.sflag [#allocation3], %s130_s29 }
  0x1b   : > { %s710_s21 = scalar_lea.hbm %s830_s0, %s370_s17  ;;  %p471_p3 = pneg %p700_p0 }
  0x1c   : > { %s469_s26 = scalar_lea.hbm %s710_s21, 128  ;;  %s474_s4 = scalar_lea.hbm %s830_s0, 1152 }
  0x1d   : > { %p470_p2 = scmp.ne.s32.totalorder %s710_s21, %s469_s26  ;;  %p475_p6 = scmp.lt.u32.totalorder %s710_s21, %s830_s0 }
  0x1e   : > { %p476_p7 = scmp.lt.u32.totalorder %s474_s4, %s469_s26  ;;  %p478_p11 = scmp.lt.u32.totalorder %s469_s26, %s710_s21 }
  0x1f   : > { %p472_p4 = pnand %p471_p3, %p470_p2 }
  0x20   : > { %p477_p10 = por %p476_p7, %p475_p6 }
  0x21   : > { %p473_p5 = pneg %p472_p4 }
  0x22   : > { %p479_p13 = por %p478_p11, %p477_p10 }
  0x24   : > { %p480_p1 = pnand %p479_p13, %p473_p5 }
  0x26   : > { %483 = shalt.err (!%p480_p1)
}
  0x27   : > { %s484_s29 = scalar_lea.vmem %s705_s6, 128  ;;  %s599_s17 = smov [#allocation2]  }
  0x28   : > { %p485_p2 = scmp.ne.s32.totalorder %s705_s6, %s484_s29  ;;  %s489_s18 = sshll.u32 %s599_s17, 4  ;;  %s490_s18 = int_to_ptr.vmem [resolvable:$false] %s489_s18 }
  0x29   : > { %s491_s22 = scalar_lea.vmem %s490_s18, 256  ;;  %p492_p9 = scmp.lt.s32.totalorder %s705_s6, %s490_s18 }
  0x2a   : > { %p487_p4 = pnand %p485_p2, %p471_p3  ;;  %p493_p6 = scmp.lt.s32.totalorder %s491_s22, %s484_s29 }
  0x2c   : > { %p488_p12 = pneg %p487_p4  ;;  %p494_p7 = por %p493_p6, %p492_p9 }
  0x2e   : > { %p495_p10 = pnand %p494_p7, %p488_p12 }
  0x30   : > { %498 = shalt.err (!%p495_p10)
}
  0x31   : > { %391 = dma.hbm_to_vmem [thread:$0]  (!%p700_p0), %s710_s21, 128, %s705_s6, %s131_s23  }
  0x32   : > { %p155_p1 = scmp.lt.s32.totalorder %s597_s16, 10  ;;  %p839_p5 = scmp.ge.s32.totalorder %s597_s16, 1 }
  0x34   : > { %p156_p3 = pnand %p839_p5, %p155_p1 }
  0x35   : > { %s742_s26 = sand.u32 (!%p156_p3), 1, %s573_s10  }
  0x36   : > { %159 = sbr.rel (%p156_p3) target bundleno = 603 (0x25b), region = 28  ;;  %s372_s27 = sshll.u32 (!%p156_p3), %s742_s26, 3 }
  0x37   : > { %s162_s3 = scalar_lea.sflag (!%p156_p3), [#allocation3], %s742_s26  ;;  %s165_s7 = scalar_lea.vmem (!%p156_p3), [#allocation2], %s372_s27 }
  0x3d   : > { %560 = dma.done.wait (%p678_p8), %s162_s3, 128  }
  0x3e   : > { %562 = vsyncadd (%p678_p8), %s162_s3, 4294967168  ;;  %p190_p9 = scmp.lt.s32.totalorder %s581_s12, 2  ;;  %s375_s6 = sshll.u32 %s581_s12, 3  ;;  %v197_v0 = vlaneseq  ;;  %v600_v1 = vmov 0   ;;  %vm204_vm0 = vcmask 261120   ;;  %v194_v5 = vld [vmem:[%s165_s7] sm:$0xff] }
  0x3f   : > { %464 = vset.pattern.permute.xlu1 %v600_v1  ;;  %463 = vset.pattern.permute.xlu0 %v600_v1  ;;  %v199_v2 = vstv %s375_s6  ;;  %v205_v7 = vsel %vm204_vm0, %v194_v5, -inf  ;;  %vm235_vm7 = vcmask 7168   ;;  %s383_s8 = smul.u32 3, %s585_s13  ;;  %s189_s18 = scalar_lea.vmem [#allocation5], %s372_s27 }
  0x40   : > { %s191_s21 = scalar_select %p190_p9, %s581_s12, 2  ;;  %v198_v3 = vshrl.u32 %v197_v0, 7  ;;  %206 = vmax.xlane.f32.xlu0 %v205_v7  ;;  %v218_v13 = vand.u32 127, %v197_v0 }
  0x41   : > { %s264_s29 = sadd.s32 %s581_s12, %s383_s8  ;;  %s268_s22 = sshll.u32 %s189_s18, 4  ;;  %s778_s22 = int_to_ptr.vmem [resolvable:$true] %s268_s22 }
  0x42   : > { %s374_s23 = sshll.u32 %s191_s21, 3  ;;  %v200_v4 = vadd.s32 %v199_v2, %v198_v3  ;;  %vm246_vm8 = vcmp.eq.s32.totalorder %v198_v3, 0  ;;  %vm247_vm9 = vcmp.eq.s32.totalorder %v218_v13, 0  ;;  %s377_s17 = sshll.u32 %s264_s29, 7 }
  0x43   : > { %s193_s24 = scalar_lea.vmem %s831_s1, %s374_s23  ;;  %vm248_vm10 = vmand %vm246_vm8, %vm247_vm9  ;;  %s776_s21 = scalar_lea.hbm %s832_s2, %s377_s17 }
  0x44   : > { %vm201_vm1 = vcmp.lt.s32.totalorder %v200_v4, 20  ;;  %v195_v6 = vld [vmem:[%s193_s24] sm:$0xff]  ;;  %s253_s12 = scalar_lea.sflag [#allocation4], %s742_s26  ;;  %s499_s13 = scalar_lea.vmem %s778_s22, 128 }
  0x45   : > { %vm202_vm2 = vcmp.ge.s32.totalorder %v195_v6, 0  ;;  %p500_p8 = scmp.ne.s32.totalorder %s778_s22, %s499_s13  ;;  %p842_p12 = scmp.ne.s32.totalorder %s836_s25, 0 }
  0x46   : > { %vm759_vm3 = vmand %vm201_vm1, %vm202_vm2  ;;  %s601_s27 = smov [#allocation5]  }
  0x47   : > { %v223_v9 = vsel %vm759_vm3, 1, %v600_v1  ;;  %p501_p0 = pnand %p500_p8, %p842_p12  ;;  %s503_s23 = sshll.u32 %s601_s27, 4  ;;  %s504_s23 = int_to_ptr.vmem [resolvable:$false] %s503_s23 }
  0x48   : > { %225 = vperm.xlu1 %464, %v223_v9   ;;  %s505_s4 = scalar_lea.vmem %s504_s23, 256  ;;  %p506_p13 = scmp.lt.s32.totalorder %s778_s22, %s504_s23 }
  0x49   : > { %p502_p11 = pneg %p501_p0  ;;  %p507_p2 = scmp.lt.s32.totalorder %s505_s4, %s499_s13 }
  0x4b   : > { %p508_p4 = por %p507_p2, %p506_p13 }
  0x4d   : > { %p509_p6 = pnand %p508_p4, %p502_p11 }
  0x56   : > { %220 = vperm.xlu0 %463, %v195_v6  }
  0xc7   : > { %v226_v14 = vpop.permute.xlu1 %225 }
  0xc8   : > { %vm227_vm4 = vcmp.eq.s32.totalorder %v226_v14, 1 }
  0xcd   : > { %v207_v10 = vpop.xlane.xlu0 %206 }
  0xce   : > { %v208_v11 = vsub.f32 %v194_v5, %v207_v10 }
  0xd0   : > { %v209_v12 = vmul.f32 1.442695, %v208_v11 }
  0xd2   : > { %465 = vpow2.f32 %v209_v12 }
  0xd5   : > { %v221_v15 = vpop.permute.xlu0 %220 }
  0xd6   : > { %vm222_vm5 = vcmp.eq.s32.totalorder %v218_v13, %v221_v15 }
  0xd7   : > { %vm228_vm6 = vmand %vm222_vm5, %vm227_vm4 }
  0xd8   : > { %v229_v17 = vsel %vm228_vm6, %v194_v5, 0.0 }
  0xd9   : > { %v230_v19 = vsel %vm204_vm0, %v229_v17, 0.0 }
  0xdc   : > { %v466_v16 = vpop.eup %465 }
  0xdd   : > { %v211_v18 = vsel %vm204_vm0, %v466_v16, 0.0 }
  0xde   : > { %212 = vadd.xlane.f32.xlu1 %v211_v18 }
  0xe2   : > { %231 = vadd.xlane.f32.xlu1 %v230_v19 }
 0x16b   : > { %v213_v20 = vpop.xlane.xlu1 %212 }
 0x16c   : > { %467 = vlog2.f32 %v213_v20 }
 0x16f   : > { %v232_v23 = vpop.xlane.xlu1 %231 }
 0x176   : > { %v468_v21 = vpop.eup %467 }
 0x177   : > { %v215_v22 = vmul.f32 0.6931472, %v468_v21 }
 0x179   : > { %v216_v24 = vadd.f32 %v215_v22, %v207_v10 }
 0x17b   : > { %v233_v25 = vsub.f32 %v216_v24, %v232_v23 }
 0x17d   : > { %v234_v26 = vsel %vm759_vm3, %v233_v25, 0.0 }
 0x17e   : > { %v236_v27 = vsel %vm235_vm7, %v234_v26, 0.0 }
 0x17f   : > { %237 = vadd.xlane.f32.xlu1 %v236_v27 }
 0x20c   : > { %v238_v28 = vpop.xlane.xlu1 %237 }
 0x20d   : > { %v239_v29 = vrot.slane %v238_v28, 4 }
 0x20f   : > { %v240_v30 = vadd.f32 %v239_v29, %v238_v28 }
 0x211   : > { %v241_v31 = vrot.slane %v240_v30, 2 }
 0x213   : > { %v242_v32 = vadd.f32 %v241_v31, %v240_v30 }
 0x215   : > { %v243_v33 = vrot.slane %v242_v32, 1 }
 0x217   : > { %v244_v34 = vadd.f32 %v243_v33, %v242_v32 }
 0x219   : > { %381 = vpush %v244_v34 }
 0x24a   : > { %s382_s3 = spop %381 }
 0x24b   : > { %v249_v35 = vstv %s382_s3 }
 0x24c   : > { %v250_v36 = vsel %vm248_vm10, %v249_v35, 0.0 }
 0x24d   : > { %251 = vst [vmem:[%s189_s18] sm:$0xff] %v250_v36 }
 0x24e   : > { %512 = shalt.err (!%p509_p6)
}
 0x24f   : > { %s513_s26 = scalar_lea.hbm %s776_s21, 128  ;;  %s517_s8 = scalar_lea.hbm %s832_s2, 1152 }
 0x250   : > { %p514_p7 = scmp.ne.s32.totalorder %s776_s21, %s513_s26  ;;  %p518_p5 = scmp.lt.u32.totalorder %s776_s21, %s832_s2 }
 0x251   : > { %p519_p3 = scmp.lt.u32.totalorder %s517_s8, %s513_s26  ;;  %p521_p8 = scmp.lt.u32.totalorder %s513_s26, %s776_s21 }
 0x252   : > { %p515_p10 = pnand %p514_p7, %p842_p12 }
 0x253   : > { %p520_p9 = por %p519_p3, %p518_p5 }
 0x254   : > { %p516_p1 = pneg %p515_p10 }
 0x255   : > { %p522_p0 = por %p521_p8, %p520_p9 }
 0x257   : > { %p523_p11 = pnand %p522_p0, %p516_p1 }
 0x259   : > { %526 = shalt.err (!%p523_p11)
}
 0x25a   : > { %386 = dma.vmem_to_hbm [thread:$0]  (%p842_p12), %s778_s22, 128, %s776_s21, %s253_s12  }
 0x25b PF: > { %p397_p13 = scmp.ge.s32.totalorder %s597_s16, 2  ;;  %s280_s18 = sand.u32 1, %s569_s9  }
 0x25c   : > { %p843_p2 = scmp.ne.s32.totalorder %s837_s28, 0  ;;  %s281_s3 = scalar_lea.sflag [#allocation4], %s280_s18 }
 0x25e   : > { %p393_p4 = pnand %p397_p13, %p843_p2 }
 0x260   : > { %564 = dma.done.wait (!%p393_p4), %s281_s3, 128  }
 0x261   : > { %566 = vsyncadd (!%p393_p4), %s281_s3, 4294967168  ;;  %s18_s16 = sadd.s32 1, %s597_s16   ;;  %s844_s9 = smov %s573_s10 }
 0x262   : > { %p15_p6 = scmp.ge.s32.totalorder %s18_s16, 11   ;;  %s845_s10 = smov %s577_s11 }
 0x263   : > { %s846_s11 = smov %s695_s30  ;;  %s847_s12 = smov %s589_s14 }
 0x264   : > { %s848_s13 = smov %s593_s15  ;;  %s849_s14 = smov %s852_s19 }
 0x265   : > { %s850_s15 = smov %s856_s20  ;;  %17 = sbr.rel (!%p15_p6) target bundleno = 7 (0x7), region = 76 }
 0x26c   :  { %286 = vsyncpa [#allocation3], 1 }
 0x26d   :  { %288 = vsyncpa [#allocation3 + $0x1], 1 }
 0x26e   :  { %289 = vsyncpa [#allocation4], 1 }
 0x26f   :  { %291 = vsyncpa [#allocation4 + $0x1], 1 }

</bundles_post_ra>
